<compile_context>
chip_gen: v6e
topology: v6e:2x2x1
jax: 0.10.0
libtpu: 0.0.40
codegen_flags: <defaults>
</compile_context>

<pallas_src>
import functools

import jax
import jax.numpy as jnp
from jax import lax
from jax.experimental import pallas as pl
from jax.experimental.pallas import tpu as pltpu


def _round_up(v, m):
    return (v + m - 1) // m * m


def _largest_divisor_at_most(n, cap):
    cap = max(1, min(cap, n))
    for d in range(cap, 0, -1):
        if n % d == 0:
            return d
    return 1


def _pick_block_n(n, lout_pad, chan, itemsize, *, length, lscr):
    """Sequences per grid step."""
    # 1) Big-M target: amortize per-grid-step overhead and fill MXU rows.
    target_m = 512
    cap = max(1, target_m // max(1, lout_pad))
    # 2) VMEM budget: double-buffered in/out blocks + padded slab + f32 accumulator,
    #    kept well under the default scoped VMEM limit on every generation (16 MiB v5e).
    chan_pad = _round_up(chan, 128)
    per_seq = (2 * (length + lout_pad) * itemsize + lscr * itemsize + lout_pad * 4) * chan_pad
    cap = min(cap, max(1, (12 << 20) // max(1, per_seq)))
    # 3) Keep >= 2 grid steps so both v7x TensorCores get work.
    if n >= 2:
        cap = min(cap, max(1, n // 2))
    return _largest_divisor_at_most(n, cap)


def _vecconv1d_kernel(x_ref, w_ref, o_ref, xpad_ref, acc_ref, *,
                      kernsz, dilation, pad_l, shift, lout):
    # x_ref:    (BN, L, C)       un-padded sequences for this block
    # w_ref:    (K, Cin, Cout)   conv taps
    # o_ref:    (BN, Lout, C)
    # xpad_ref: (BN, Lscr, C)    VMEM scratch: zero-padded input slab
    # acc_ref:  (BN*Lout_pad, C) VMEM scratch: f32 tap accumulator
    bn, length, cin = x_ref.shape
    cout = o_ref.shape[2]
    lscr = xpad_ref.shape[1]
    lout_pad = lscr - shift - dilation * (kernsz - 1)   # multiple of the sublane tile
    m = bn * lout_pad

    # --- Zero the pad rows of the slab ONCE; the data rows are fully rewritten every ---
    # --- grid step below, so the pad rows remain zero for all later steps.           ---
    @pl.when(pl.program_id(0) == 0)
    def _():
        xpad_ref[...] = jnp.zeros(xpad_ref.shape, xpad_ref.dtype)

    data_start = shift + pad_l                           # sublane-aligned by construction
    xpad_ref[:, data_start:data_start + length, :] = x_ref[...]

    # --- K dilated taps: one flattened (BN*Lp, Cin) x (Cin, Cout) MXU matmul each. ---
    def tap(k):                                          # static unroll over taps
        start = shift + k * dilation
        xk = xpad_ref[:, start:start + lout_pad, :].reshape(m, cin)
        return jnp.dot(xk, w_ref[k], preferred_element_type=jnp.float32)

    if kernsz == 1:
        y = tap(0)
    else:
        acc_ref[...] = tap(0)                            # f32 VMEM accumulation keeps
        for k in range(1, kernsz - 1):                   # vreg pressure bounded for big M
            acc_ref[...] += tap(k)
        y = acc_ref[...] + tap(kernsz - 1)               # last tap fused with final read

    # --- Drop the alignment rows and store. ---
    y = y.reshape(bn, lout_pad, cout)[:, :lout, :]
    o_ref[...] = y.astype(o_ref.dtype)


def vec_conv1d(x, weight, *, kernsz, dilation=1, edges_to_nodes=False):
    """x: (batch, length, chan, 3); weight: (chan_out, chan_in, kernsz) (PyTorch Conv1d layout)."""
    batch, length, chan, three = x.shape
    assert three == 3
    assert weight.shape == (chan, chan, kernsz)

    if edges_to_nodes:
        assert kernsz % 2 == 0 and dilation == 1
        pad_l = pad_r = kernsz // 2                        # newlength = length + 1
    else:
        assert kernsz % 2 == 1
        pad_l = pad_r = dilation * (kernsz - 1) // 2       # padding='same' -> symmetric
    lout = length + pad_l + pad_r - dilation * (kernsz - 1)

    n = 3 * batch
    # (batch, length, chan, 3) -> (3*batch, length, chan).  Required only by the module's
    # I/O contract (3-vector axis last); no extra pad copy is made.
    x_nlc = jnp.transpose(x, (0, 3, 1, 2)).reshape(n, length, chan)
    # PyTorch (c_out, c_in, k) -> (k, c_in, c_out): each tap is a plain matmul operand.
    w_kio = jnp.transpose(weight, (2, 1, 0))

    itemsize = jnp.dtype(x.dtype).itemsize
    sub = 8 * max(1, 4 // itemsize)                        # sublane tile: f32->8, bf16->16
    shift = _round_up(pad_l, sub) - pad_l                  # extra left zeros -> aligned stores
    lout_pad = _round_up(lout, sub)                        # alignment rows (results dropped)
    lscr = shift + dilation * (kernsz - 1) + lout_pad      # padded slab length per sequence

    bn = _pick_block_n(n, lout_pad, chan, itemsize, length=length, lscr=lscr)
    grid = (n // bn,)

    kern = functools.partial(_vecconv1d_kernel, kernsz=kernsz, dilation=dilation,
                             pad_l=pad_l, shift=shift, lout=lout)
    y = pl.pallas_call(
        kern,
        out_shape=jax.ShapeDtypeStruct((n, lout, chan), x.dtype),
        grid_spec=pltpu.PrefetchScalarGridSpec(
            num_scalar_prefetch=0,
            grid=grid,
            in_specs=[
                pl.BlockSpec((bn, length, chan), lambda i: (i, 0, 0)),
                pl.BlockSpec((kernsz, chan, chan), lambda i: (0, 0, 0)),
            ],
            out_specs=pl.BlockSpec((bn, lout, chan), lambda i: (i, 0, 0)),
            scratch_shapes=[
                pltpu.VMEM((bn, lscr, chan), x.dtype),            # zero-padded input slab
                pltpu.VMEM((bn * lout_pad, chan), jnp.float32),   # f32 tap accumulator
            ],
        ),
        compiler_params=pltpu.CompilerParams(
            dimension_semantics=("parallel",)),
    )(x_nlc, w_kio)

    # (3*batch, lout, chan) -> (batch, lout, chan, 3)
    return jnp.transpose(y.reshape(batch, 3, lout, chan), (0, 2, 3, 1))


def _reference(x, weight, *, dilation, pad_l, pad_r):
    """Pure-JAX reference mirroring torch Conv1d (NCL, OIL weights, no bias)."""
    batch, length, chan, _ = x.shape
    x_ncl = jnp.transpose(x, (0, 3, 2, 1)).reshape(3 * batch, chan, length)
    y = lax.conv_general_dilated(
        x_ncl, weight,
        window_strides=(1,),
        padding=[(pad_l, pad_r)],
        rhs_dilation=(dilation,),
        dimension_numbers=("NCH", "OIH", "NCH"),
    )
    lout = y.shape[-1]
    return jnp.transpose(y.reshape(batch, 3, chan, lout), (0, 3, 2, 1))


if __name__ == "__main__":
    key = jax.random.PRNGKey(0)
    keys = jax.random.split(key, 6)

    def run_case(batch, length, chan, kernsz, dilation, edges_to_nodes, kx, kw):
        x = jax.random.normal(kx, (batch, length, chan, 3), dtype=jnp.float32)
        w = jax.random.normal(kw, (chan, chan, kernsz), dtype=jnp.float32) * 0.1
        y = vec_conv1d(x, w, kernsz=kernsz, dilation=dilation, edges_to_nodes=edges_to_nodes)
        y = jax.block_until_ready(y)
        if edges_to_nodes:
            pad_l = pad_r = kernsz // 2
        else:
            pad_l = pad_r = dilation * (kernsz - 1) // 2
        y_ref = _reference(x, w, dilation=dilation, pad_l=pad_l, pad_r=pad_r)
        assert y.shape == y_ref.shape, (y.shape, y_ref.shape)
        err = float(jnp.max(jnp.abs(y - y_ref)))
        assert jnp.allclose(y, y_ref, atol=1e-4, rtol=1e-5), err

    # 'same' conv (edges_to_nodes=False), the module's default path.
    run_case(2, 16, 4, 3, 1, False, keys[0], keys[1])
    # dilated 'same' conv.
    run_case(2, 16, 4, 3, 2, False, keys[2], keys[3])
    # edges_to_nodes=True path (even kernel, newlength = length + 1).
    run_case(2, 15, 4, 4, 1, True, keys[4], keys[5])

    print("KERNEL_OK")
</pallas_src>

<mosaic_0001>
module attributes {stable_mosaic.version = 11 : i64} {
  func.func @_vecconv1d_kernel(%arg0: i32, %arg1: memref<3x16x4xf32, #tpu.memory_space<vmem>>, %arg2: memref<3x4x4xf32, #tpu.memory_space<vmem>>, %arg3: memref<3x16x4xf32, #tpu.memory_space<vmem>>, %arg4: memref<3x25x4xf32, #tpu.memory_space<vmem>>, %arg5: memref<48x4xf32, #tpu.memory_space<vmem>>) attributes {dimension_semantics = [#tpu.dimension_semantics<parallel>], iteration_bounds = array<i64: 2>, scalar_prefetch = 0 : i64, scratch_operands = 2 : i64, tpu.core_type = #tpu.core_type<tc>, window_params = [{transform_indices = @transform_0, window_bounds = array<i64: 3, 16, 4>}, {pipeline_mode = #tpu.pipeline_mode<synchronous>, transform_indices = @transform_1, window_bounds = array<i64: 3, 4, 4>}, {transform_indices = @transform_2, window_bounds = array<i64: 3, 16, 4>}]} {
    %c0_i32 = arith.constant 0 : i32
    %0 = arith.cmpi eq, %arg0, %c0_i32 : i32
    %1 = arith.extui %0 : i1 to i32
    %c0_i32_0 = arith.constant 0 : i32
    %2 = arith.cmpi ne, %1, %c0_i32_0 : i32
    scf.if %2 {
      %cst_32 = arith.constant 0.000000e+00 : f32
      %28 = vector.broadcast %cst_32 : f32 to vector<3x25x4xf32>
      %c0_33 = arith.constant 0 : index
      %c0_34 = arith.constant 0 : index
      %c0_35 = arith.constant 0 : index
      %29 = vector.load %arg4[%c0_33, %c0_34, %c0_35] : memref<3x25x4xf32, #tpu.memory_space<vmem>>, vector<3x25x4xf32>
      tpu.vector_store %arg4[%c0_33, %c0_34, %c0_35], %28 {strides = array<i32>} : memref<3x25x4xf32, #tpu.memory_space<vmem>>, vector<3x25x4xf32>,
    } else {
    }
    %c0 = arith.constant 0 : index
    %c0_1 = arith.constant 0 : index
    %c0_2 = arith.constant 0 : index
    %3 = vector.load %arg1[%c0, %c0_1, %c0_2] : memref<3x16x4xf32, #tpu.memory_space<vmem>>, vector<3x16x4xf32>
    %c0_3 = arith.constant 0 : index
    %c8 = arith.constant 8 : index
    %c0_4 = arith.constant 0 : index
    %4 = vector.load %arg4[%c0_3, %c8, %c0_4] : memref<3x25x4xf32, #tpu.memory_space<vmem>>, vector<3x16x4xf32>
    tpu.vector_store %arg4[%c0_3, %c8, %c0_4], %3 {strides = array<i32>} : memref<3x25x4xf32, #tpu.memory_space<vmem>>, vector<3x16x4xf32>,
    %c0_5 = arith.constant 0 : index
    %c7 = arith.constant 7 : index
    %c0_6 = arith.constant 0 : index
    %5 = vector.load %arg4[%c0_5, %c7, %c0_6] : memref<3x25x4xf32, #tpu.memory_space<vmem>>, vector<3x16x4xf32>
    %6 = vector.shape_cast %5 : vector<3x16x4xf32> to vector<48x4xf32>
    %c0_7 = arith.constant 0 : index
    %c0_8 = arith.constant 0 : index
    %c0_9 = arith.constant 0 : index
    %7 = vector.load %arg2[%c0_7, %c0_8, %c0_9] : memref<3x4x4xf32, #tpu.memory_space<vmem>>, vector<1x4x4xf32>
    %8 = vector.shape_cast %7 : vector<1x4x4xf32> to vector<4x4xf32>
    %cst = arith.constant dense<0.000000e+00> : vector<48x4xf32>
    %9 = tpu.matmul %6, %8, %cst {dimension_numbers = #tpu.dot_dimension_numbers<[1], [0], [0], [1], [0, 0, 1, 1], [], []>} : vector<48x4xf32>, vector<4x4xf32>, vector<48x4xf32> -> vector<48x4xf32>
    %c0_10 = arith.constant 0 : index
    %c0_11 = arith.constant 0 : index
    %10 = vector.load %arg5[%c0_10, %c0_11] : memref<48x4xf32, #tpu.memory_space<vmem>>, vector<48x4xf32>
    tpu.vector_store %arg5[%c0_10, %c0_11], %9 {strides = array<i32>} : memref<48x4xf32, #tpu.memory_space<vmem>>, vector<48x4xf32>,
    %c0_12 = arith.constant 0 : index
    %c0_13 = arith.constant 0 : index
    %11 = vector.load %arg5[%c0_12, %c0_13] : memref<48x4xf32, #tpu.memory_space<vmem>>, vector<48x4xf32>
    %c0_14 = arith.constant 0 : index
    %c8_15 = arith.constant 8 : index
    %c0_16 = arith.constant 0 : index
    %12 = vector.load %arg4[%c0_14, %c8_15, %c0_16] : memref<3x25x4xf32, #tpu.memory_space<vmem>>, vector<3x16x4xf32>
    %13 = vector.shape_cast %12 : vector<3x16x4xf32> to vector<48x4xf32>
    %c1 = arith.constant 1 : index
    %c0_17 = arith.constant 0 : index
    %c0_18 = arith.constant 0 : index
    %14 = vector.load %arg2[%c1, %c0_17, %c0_18] : memref<3x4x4xf32, #tpu.memory_space<vmem>>, vector<1x4x4xf32>
    %15 = vector.shape_cast %14 : vector<1x4x4xf32> to vector<4x4xf32>
    %cst_19 = arith.constant dense<0.000000e+00> : vector<48x4xf32>
    %16 = tpu.matmul %13, %15, %cst_19 {dimension_numbers = #tpu.dot_dimension_numbers<[1], [0], [0], [1], [0, 0, 1, 1], [], []>} : vector<48x4xf32>, vector<4x4xf32>, vector<48x4xf32> -> vector<48x4xf32>
    %17 = arith.addf %11, %16 : vector<48x4xf32>
    %c0_20 = arith.constant 0 : index
    %c0_21 = arith.constant 0 : index
    %18 = vector.load %arg5[%c0_20, %c0_21] : memref<48x4xf32, #tpu.memory_space<vmem>>, vector<48x4xf32>
    tpu.vector_store %arg5[%c0_20, %c0_21], %17 {strides = array<i32>} : memref<48x4xf32, #tpu.memory_space<vmem>>, vector<48x4xf32>,
    %c0_22 = arith.constant 0 : index
    %c0_23 = arith.constant 0 : index
    %19 = vector.load %arg5[%c0_22, %c0_23] : memref<48x4xf32, #tpu.memory_space<vmem>>, vector<48x4xf32>
    %c0_24 = arith.constant 0 : index
    %c9 = arith.constant 9 : index
    %c0_25 = arith.constant 0 : index
    %20 = vector.load %arg4[%c0_24, %c9, %c0_25] : memref<3x25x4xf32, #tpu.memory_space<vmem>>, vector<3x16x4xf32>
    %21 = vector.shape_cast %20 : vector<3x16x4xf32> to vector<48x4xf32>
    %c2 = arith.constant 2 : index
    %c0_26 = arith.constant 0 : index
    %c0_27 = arith.constant 0 : index
    %22 = vector.load %arg2[%c2, %c0_26, %c0_27] : memref<3x4x4xf32, #tpu.memory_space<vmem>>, vector<1x4x4xf32>
    %23 = vector.shape_cast %22 : vector<1x4x4xf32> to vector<4x4xf32>
    %cst_28 = arith.constant dense<0.000000e+00> : vector<48x4xf32>
    %24 = tpu.matmul %21, %23, %cst_28 {dimension_numbers = #tpu.dot_dimension_numbers<[1], [0], [0], [1], [0, 0, 1, 1], [], []>} : vector<48x4xf32>, vector<4x4xf32>, vector<48x4xf32> -> vector<48x4xf32>
    %25 = arith.addf %19, %24 : vector<48x4xf32>
    %26 = vector.shape_cast %25 : vector<48x4xf32> to vector<3x16x4xf32>
    %c0_29 = arith.constant 0 : index
    %c0_30 = arith.constant 0 : index
    %c0_31 = arith.constant 0 : index
    %27 = vector.load %arg3[%c0_29, %c0_30, %c0_31] : memref<3x16x4xf32, #tpu.memory_space<vmem>>, vector<3x16x4xf32>
    tpu.vector_store %arg3[%c0_29, %c0_30, %c0_31], %26 {strides = array<i32>} : memref<3x16x4xf32, #tpu.memory_space<vmem>>, vector<3x16x4xf32>,
    return
  }
  func.func @transform_0(%arg0: i32) -> (i32, i32, i32) {
    %c0_i32 = arith.constant 0 : i32
    %c0_i32_0 = arith.constant 0 : i32
    %c0_i32_1 = arith.constant 0 : i32
    return %arg0, %c0_i32, %c0_i32_0 : i32, i32, i32
  }
  func.func @transform_1(%arg0: i32) -> (i32, i32, i32) {
    %c0_i32 = arith.constant 0 : i32
    %c0_i32_0 = arith.constant 0 : i32
    %c0_i32_1 = arith.constant 0 : i32
    %c0_i32_2 = arith.constant 0 : i32
    return %c0_i32, %c0_i32_0, %c0_i32_1 : i32, i32, i32
  }
  func.func @transform_2(%arg0: i32) -> (i32, i32, i32) {
    %c0_i32 = arith.constant 0 : i32
    %c0_i32_0 = arith.constant 0 : i32
    %c0_i32_1 = arith.constant 0 : i32
    return %arg0, %c0_i32, %c0_i32_0 : i32, i32, i32
  }
}

</mosaic_0001>

<bundles_post_ra>
// kernel: tpu_custom_call.1
= control target key start
LH: loop header
LB: loop body
LE: loop exit
PB: predicated region body
PF: predicated region fallthrough
CT: control target
= control target key end

     0   :  { %s781_s9 = smov 0   ;;  %s873_s0 = inlined_call_operand.vmem [shape: f32[6,16,4], index: 0, kind: input, shape index: {}]   ;;  %s874_s1 = inlined_call_operand.vmem [shape: f32[3,4,4], index: 1, kind: input, shape index: {}]   ;;  %s875_s2 = inlined_call_operand.vmem [shape: f32[6,16,4], index: 2, kind: output, shape index: {}]  }
   0x1 LB: > { %s655_s10 = sadd.s32 4294967295, %s763_s9   ;;  %p659_p0 = scmp.ge.s32.totalorder %s763_s9, 1  ;;  %s763_s9 = sphi %s781_s9, %s12_s9  }
   0x2   : > { %p114_p1 = scmp.lt.s32.totalorder %s763_s9, 3 }
   0x4   : > { %p115_p2 = pnand %p659_p0, %p114_p1 }
   0x5   : > { %s138_s11 = smul.u32 (!%p115_p2), 3, %s655_s10  ;;  %p664_p4 = scmp.ne.s32.totalorder (!%p115_p2), %s655_s10, 0 }
   0x6   : > { %118 = sbr.rel (%p115_p2) target bundleno = 259 (0x103), region = 28 }
   0x7   : > { %p139_p3 = scmp.lt.s32.totalorder (!%p115_p2), %s138_s11, 5 }
   0xb   : > { %s877_s11 = smov (!%p139_p3, %s138_s11), 5  ;;  %155 = sbr.rel (%p664_p4) target bundleno = 24 (0x18), region = 32 }
   0xc   : > { %s690_s12 = sshll.u32 %s877_s11, 4 }
   0xd   : > { %s792_s15 = scalar_lea.vmem %s873_s0, %s690_s12  ;;  %s797_s18 = scalar_lea.vmem %s875_s2, %s690_s12 }
  0x10   : > { %vm156_vm0 = vcmask 31744   ;;  %vm160_vm1 = vcmask 24576   ;;  %v765_v0 = vmov 0.0  }
  0x11   : > { %157 = vst.msk [vmem:[#allocation2] sm:$0xff] %vm156_vm0, %v765_v0  ;;  %158 = vst.msk [vmem:[#allocation2 + $0x8] sm:$0xff] %vm156_vm0, %v765_v0 }
  0x12   : > { %159 = vst.msk [vmem:[#allocation2 + $0x10] sm:$0xff] %vm156_vm0, %v765_v0  ;;  %162 = vst.msk [vmem:[#allocation2 + $0x20] sm:$0xff] %vm156_vm0, %v765_v0 }
  0x13   : > { %163 = vst.msk [vmem:[#allocation2 + $0x28] sm:$0xff] %vm156_vm0, %v765_v0  ;;  %164 = vst.msk [vmem:[#allocation2 + $0x30] sm:$0xff] %vm156_vm0, %v765_v0 }
  0x14   : > { %166 = vst.msk [vmem:[#allocation2 + $0x40] sm:$0xff] %vm156_vm0, %v765_v0  ;;  %167 = vst.msk [vmem:[#allocation2 + $0x48] sm:$0xff] %vm156_vm0, %v765_v0 }
  0x15   : > { %168 = vst.msk [vmem:[#allocation2 + $0x50] sm:$0xff] %vm156_vm0, %v765_v0 }
  0x16   : > { %161 = vst.msk [vmem:[#allocation2 + $0x18] sm:$0x1] %vm160_vm1, %v765_v0  ;;  %165 = vst.msk [vmem:[#allocation2 + $0x38] sm:$0x1] %vm160_vm1, %v765_v0 }
  0x17   : > { %169 = vst.msk [vmem:[#allocation2 + $0x58] sm:$0x1] %vm160_vm1, %v765_v0 }
  0x18 PF: > { %v189_v1 = vld [vmem:[%s874_s1] sm:$0xf]  ;;  %vm208_vm2 = vcmask 1043456   ;;  %vm176_vm3 = vcmask 31744   ;;  %v172_v3 = vld [vmem:[%s792_s15 + $0x10] sm:$0xff]  ;;  %v171_v5 = vld [vmem:[%s792_s15 + $0x8] sm:$0xff] }
  0x19   : > { %v170_v2 = vld [vmem:[%s792_s15] sm:$0xff]  ;;  %746 = vmatprep.subr.msk.mxu1 %vm208_vm2, %v189_v1  ;;  %713 = vmatprep.subr.msk.mxu0 %vm208_vm2, %v189_v1  ;;  %179 = vst.msk [vmem:[#allocation2 + $0x28] sm:$0xff] %vm176_vm3, %v172_v3  ;;  %v173_v6 = vld [vmem:[%s792_s15 + $0x18] sm:$0xff]  ;;  %178 = vst.msk [vmem:[#allocation2 + $0x10] sm:$0xff] %vm176_vm3, %v171_v5 }
  0x1a   : > { %177 = vst.msk [vmem:[#allocation2 + $0x8] sm:$0xff] %vm176_vm3, %v170_v2  ;;  %v672_v4 = vld [vmem:[%s874_s1 + $0x4] sm:$0xf]  ;;  %747 = vmatpush3.msk.msra.mxu1 %vm208_vm2, %v189_v1  ;;  %714 = vmatpush3.msk.msra.mxu0 %vm208_vm2, %v189_v1  ;;  %180 = vst.msk [vmem:[#allocation2 + $0x30] sm:$0xff] %vm176_vm3, %v173_v6  ;;  %v175_v8 = vld [vmem:[%s792_s15 + $0x28] sm:$0xff] }
  0x1b   : > { %v174_v7 = vld [vmem:[%s792_s15 + $0x20] sm:$0xff]  ;;  %v680_v9 = vld [vmem:[%s874_s1 + $0x8] sm:$0xf]  ;;  %724 = vmatprep.subr.msk.mxu1 %vm208_vm2, %v672_v4  ;;  %182 = vst.msk [vmem:[#allocation2 + $0x50] sm:$0xff] %vm176_vm3, %v175_v8 }
  0x1c   : > { %181 = vst.msk [vmem:[#allocation2 + $0x48] sm:$0xff] %vm176_vm3, %v174_v7  ;;  %735 = vmatprep.subr.msk.mxu0 %vm208_vm2, %v680_v9 }
  0x20   : > { %v185_v11 = vld [vmem:[#allocation2 + $0x27] sm:$0xff]  ;;  %v462_v18 = vld [vmem:[#allocation2 + $0x11] sm:$0xff] }
  0x21   : > { %v183_v10 = vld [vmem:[#allocation2 + $0x7] sm:$0xff]  ;;  %718 = vmatprep.mubr.msk.f32.mxu1 %vm176_vm3, %v185_v11  ;;  %v184_v12 = vld [vmem:[#allocation2 + $0xf] sm:$0xff] }
  0x22   : > { %715 = vmatprep.mubr.msk.f32.mxu0 %vm176_vm3, %v183_v10  ;;  %v186_v13 = vld [vmem:[#allocation2 + $0x2f] sm:$0xff] }
  0x23   : > { %716 = vmatmul.mubr.msk.f32.vlgmr.msra.gmra.mxu0 %vm176_vm3, %v184_v12  ;;  %719 = vmatmul.mubr.msk.f32.vlgmr.msra.gmra.mxu1 %vm176_vm3, %v186_v13  ;;  %v187_v14 = vld [vmem:[#allocation2 + $0x47] sm:$0xff]  ;;  %v188_v15 = vld [vmem:[#allocation2 + $0x4f] sm:$0xff] }
  0x24   : > { %725 = vmatpush3.msk.msra.mxu1 %vm208_vm2, %v672_v4  ;;  %721 = vmatprep.mubr.msk.f32.mxu1 %vm176_vm3, %v187_v14  ;;  %v461_v16 = vld [vmem:[#allocation2 + $0x9] sm:$0xff]  ;;  %v464_v21 = vld [vmem:[#allocation2 + $0x31] sm:$0xff] }
  0x25   : > { %v319_v17 = vld [vmem:[#allocation2 + $0x8] sm:$0xff]  ;;  %736 = vmatpush3.msk.msra.mxu0 %vm208_vm2, %v680_v9  ;;  %737 = vmatprep.mubr.msk.f32.mxu0 %vm176_vm3, %v461_v16  ;;  %v320_v20 = vld [vmem:[#allocation2 + $0x10] sm:$0xff] }
  0x26   : > { %v463_v19 = vld [vmem:[#allocation2 + $0x29] sm:$0xff]  ;;  %v466_v25 = vld [vmem:[#allocation2 + $0x51] sm:$0xff] }
  0x27   : > { %722 = vmatmul.mubr.msk.f32.gmra.mxu1 %vm176_vm3, %v188_v15  ;;  %738 = vmatmul.mubr.msk.f32.vlgmr.msra.gmra.mxu0 %vm176_vm3, %v462_v18  ;;  %v321_v22 = vld [vmem:[#allocation2 + $0x28] sm:$0xff]  ;;  %v322_v24 = vld [vmem:[#allocation2 + $0x30] sm:$0xff] }
  0x28   : > { %726 = vmatprep.mubr.msk.f32.mxu1 %vm176_vm3, %v319_v17  ;;  %740 = vmatprep.mubr.msk.f32.mxu0 %vm176_vm3, %v463_v19  ;;  %v465_v23 = vld [vmem:[#allocation2 + $0x49] sm:$0xff] }
  0x29   : > { %v323_v26 = vld [vmem:[#allocation2 + $0x48] sm:$0xff]  ;;  %v324_v27 = vld [vmem:[#allocation2 + $0x50] sm:$0xff] }
  0x2b   : > { %727 = vmatmul.mubr.msk.f32.vlgmr.msra.gmra.mxu1 %vm176_vm3, %v320_v20  ;;  %741 = vmatmul.mubr.msk.f32.gmra.mxu0 %vm176_vm3, %v464_v21 }
  0x2c   : > { %729 = vmatprep.mubr.msk.f32.mxu1 %vm176_vm3, %v321_v22  ;;  %743 = vmatprep.mubr.msk.f32.mxu0 %vm176_vm3, %v465_v23 }
  0x2f   : > { %730 = vmatmul.mubr.msk.f32.gmra.mxu1 %vm176_vm3, %v322_v24  ;;  %744 = vmatmul.mubr.msk.f32.gmra.mxu0 %vm176_vm3, %v466_v25 }
  0x30   : > { %732 = vmatprep.mubr.msk.f32.mxu1 %vm176_vm3, %v323_v26 }
  0x33   : > { %733 = vmatmul.mubr.msk.f32.gmra.mxu1 %vm176_vm3, %v324_v27 }
  0xe3   : > { %v717_v28 = vpop.f32.mrf.mxu0  ;;  %v720_v29 = vpop.f32.mrf.mxu1 }
  0xe4   : > { %308 = vst.msk [vmem:[#allocation3 + $0x8] sm:$0xff] %vm176_vm3, %v717_v28  ;;  %310 = vst.msk [vmem:[#allocation3 + $0x18] sm:$0xff] %vm176_vm3, %v720_v29 }
  0xe5   : > { %v278_v30 = vpop.f32.mrf.mxu0  ;;  %v288_v31 = vpop.f32.mrf.mxu1 }
  0xe6   : > { %307 = vst.msk [vmem:[#allocation3] sm:$0xff] %vm176_vm3, %v278_v30  ;;  %309 = vst.msk [vmem:[#allocation3 + $0x10] sm:$0xff] %vm176_vm3, %v288_v31 }
  0xe7   : > { %v723_v32 = vpop.f32.mrf.mxu1  ;;  %v739_v36 = vpop.f32.mrf.mxu0 }
  0xe8   : > { %312 = vst.msk [vmem:[#allocation3 + $0x28] sm:$0xff] %vm176_vm3, %v723_v32 }
  0xe9   : > { %v298_v33 = vpop.f32.mrf.mxu1  ;;  %v556_v43 = vpop.f32.mrf.mxu0 }
  0xea   : > { %311 = vst.msk [vmem:[#allocation3 + $0x20] sm:$0xff] %vm176_vm3, %v298_v33 }
  0xeb   : > { %v314_v34 = vld [vmem:[#allocation3 + $0x8] sm:$0xff]  ;;  %v728_v35 = vpop.f32.mrf.mxu1  ;;  %v316_v41 = vld [vmem:[#allocation3 + $0x18] sm:$0xff]  ;;  %v742_v50 = vpop.f32.mrf.mxu0 }
  0xec   : > { %v444_v37 = vadd.f32 %v728_v35, %v314_v34 }
  0xed   : > { %v313_v38 = vld [vmem:[#allocation3] sm:$0xff]  ;;  %v414_v39 = vpop.f32.mrf.mxu1  ;;  %v315_v45 = vld [vmem:[#allocation3 + $0x10] sm:$0xff]  ;;  %v566_v58 = vpop.f32.mrf.mxu0 }
  0xee   : > { %450 = vst.msk [vmem:[#allocation3 + $0x8] sm:$0xff] %vm176_vm3, %v444_v37  ;;  %v443_v40 = vadd.f32 %v414_v39, %v313_v38 }
  0xef   : > { %v731_v42 = vpop.f32.mrf.mxu1  ;;  %v318_v48 = vld [vmem:[#allocation3 + $0x28] sm:$0xff]  ;;  %v745_v63 = vpop.f32.mrf.mxu0 }
  0xf0   : > { %449 = vst.msk [vmem:[#allocation3] sm:$0xff] %vm176_vm3, %v443_v40  ;;  %v446_v44 = vadd.f32 %v731_v42, %v316_v41 }
  0xf1   : > { %v424_v46 = vpop.f32.mrf.mxu1  ;;  %v317_v53 = vld [vmem:[#allocation3 + $0x20] sm:$0xff]  ;;  %v576_v4 = vpop.f32.mrf.mxu0 }
  0xf2   : > { %452 = vst.msk [vmem:[#allocation3 + $0x18] sm:$0xff] %vm176_vm3, %v446_v44  ;;  %v445_v47 = vadd.f32 %v424_v46, %v315_v45 }
  0xf3   : > { %v734_v49 = vpop.f32.mrf.mxu1 }
  0xf4   : > { %451 = vst.msk [vmem:[#allocation3 + $0x10] sm:$0xff] %vm176_vm3, %v445_v47  ;;  %v448_v51 = vadd.f32 %v734_v49, %v318_v48 }
  0xf5   : > { %v456_v52 = vld [vmem:[#allocation3 + $0x8] sm:$0xff]  ;;  %v434_v54 = vpop.f32.mrf.mxu1 }
  0xf6   : > { %454 = vst.msk [vmem:[#allocation3 + $0x28] sm:$0xff] %vm176_vm3, %v448_v51  ;;  %v586_v55 = vadd.f32 %v739_v36, %v456_v52  ;;  %v447_v56 = vadd.f32 %v434_v54, %v317_v53 }
  0xf7   : > { %v455_v57 = vld [vmem:[#allocation3] sm:$0xff] }
  0xf8   : > { %592 = vst.msk [vmem:[%s797_s18 + $0x8] sm:$0xff] %vm176_vm3, %v586_v55  ;;  %453 = vst.msk [vmem:[#allocation3 + $0x20] sm:$0xff] %vm176_vm3, %v447_v56  ;;  %v585_v59 = vadd.f32 %v556_v43, %v455_v57 }
  0xf9   : > { %v458_v60 = vld [vmem:[#allocation3 + $0x18] sm:$0xff] }
  0xfa   : > { %591 = vst.msk [vmem:[%s797_s18] sm:$0xff] %vm176_vm3, %v585_v59  ;;  %v588_v61 = vadd.f32 %v742_v50, %v458_v60 }
  0xfb   : > { %v457_v62 = vld [vmem:[#allocation3 + $0x10] sm:$0xff] }
  0xfc   : > { %594 = vst.msk [vmem:[%s797_s18 + $0x18] sm:$0xff] %vm176_vm3, %v588_v61  ;;  %v587_v0 = vadd.f32 %v566_v58, %v457_v62 }
  0xfd   : > { %v460_v1 = vld [vmem:[#allocation3 + $0x28] sm:$0xff] }
  0xfe   : > { %593 = vst.msk [vmem:[%s797_s18 + $0x10] sm:$0xff] %vm176_vm3, %v587_v0  ;;  %v590_v2 = vadd.f32 %v745_v63, %v460_v1 }
  0xff   : > { %v459_v3 = vld [vmem:[#allocation3 + $0x20] sm:$0xff] }
 0x100   : > { %596 = vst.msk [vmem:[%s797_s18 + $0x28] sm:$0xff] %vm176_vm3, %v590_v2  ;;  %v589_v5 = vadd.f32 %v576_v4, %v459_v3 }
 0x102   : > { %595 = vst.msk [vmem:[%s797_s18 + $0x20] sm:$0xff] %vm176_vm3, %v589_v5 }
 0x103 PF: > { %s12_s9 = sadd.s32 1, %s763_s9  }
 0x104   : > { %p9_p5 = scmp.ge.s32.totalorder %s12_s9, 4  }
 0x106   :  { %11 = sbr.rel (!%p9_p5) target bundleno = 1 (0x1), region = 64 }

</bundles_post_ra>
